<compile_context>
chip_gen: v7x
topology: tpu7x:2x2x1
jax: 0.10.0
libtpu: 0.0.40
codegen_flags: <defaults>
</compile_context>

<pallas_src>
import jax
import jax.numpy as jnp
from jax.experimental import pallas as pl
from jax.experimental.pallas import tpu as pltpu


def bahdanau_kernel(enc_ref, dec_ref, we_ref, wf_ref, ctx_ref, attn_ref):
    # enc_ref : (TB, L, E)   encoder_out tile
    # dec_ref : (TB, A)      precomputed Wd @ hidden + bd + be
    # we_ref  : (E, A)       encoder weight, pre-transposed
    # wf_ref  : (1, A)       final ("full") layer weight as a row
    # ctx_ref : (TB, E)      context vectors
    # attn_ref: (TB, L)      attention weights (lane-dense over L)
    TB, L, E = enc_ref.shape
    A = we_ref.shape[1]

    enc = enc_ref[...]                                          # (TB, L, E)

    # Encoder projection: one big matmul with M = TB*L (fills the MXU).
    enc_proj = jnp.dot(enc.reshape(TB * L, E), we_ref[...],
                       preferred_element_type=jnp.float32)      # (TB*L, A)
    act = jnp.tanh(enc_proj.reshape(TB, L, A)
                   + dec_ref[...][:, None, :])                   # (TB, L, A)

    # "full" projection (A -> 1): VPU multiply + lane reduce over A.
    # (bf omitted: softmax is shift-invariant, so it is dead compute.)
    energies = jnp.sum(act * wf_ref[...], axis=-1)               # (TB, L)

    # Softmax over the sequence (last / lane axis) == PyTorch dim=1.
    m = jnp.max(energies, axis=-1, keepdims=True)                # (TB, 1)
    p = jnp.exp(energies - m)                                    # (TB, L)
    denom = jnp.sum(p, axis=-1, keepdims=True)                   # (TB, 1)
    # approx=False keeps exact parity with the PyTorch reference; the
    # denominator is only TB scalars so the exact divide is negligible.
    attn = p * pl.reciprocal(denom, approx=False)                # (TB, L)
    attn_ref[...] = attn

    # Context vector: contract L on the MXU (batched (1, L) @ (L, E)).
    ctx = jnp.einsum('bql,ble->bqe', attn[:, None, :], enc,
                     preferred_element_type=jnp.float32)         # (TB, 1, E)
    ctx_ref[...] = ctx[:, 0, :]


def attention_bahdanau(encoder_out, hidden_decoder, params):
    """encoder_out: (B, L, E) f32, hidden_decoder: (B, D) f32.
    Returns (context_vector (B, E), attention_weights (B, L))."""
    B, L, E = encoder_out.shape
    A = params["We"].shape[0]

    # Batch-block size: whole batch if small, otherwise sublane-aligned
    # blocks of 8 (pad B up to a multiple of 8).  Grid over batch blocks is
    # "parallel" so v7x's two TensorCores can split it when B is large.
    # TODO(synk): for very long L, add an L-tile grid axis with an online
    # softmax so the enc block stays small under v7x's 64 MiB VMEM.
    TB = B if B <= 8 else 8
    n_blocks = pl.cdiv(B, TB)
    B_pad = n_blocks * TB
    if B_pad != B:
        pad = B_pad - B
        encoder_out = jnp.pad(encoder_out, ((0, pad), (0, 0), (0, 0)))
        hidden_decoder = jnp.pad(hidden_decoder, ((0, pad), (0, 0)))

    # Hoist the decoder projection and both biases out of the kernel:
    # a single XLA (B, D) @ (D, A) matmul.
    dec_comb = (hidden_decoder @ params["Wd"].T
                + params["bd"] + params["be"]).astype(jnp.float32)   # (B_pad, A)

    we_t = params["We"].T.astype(jnp.float32)                        # (E, A)
    wf_row = params["Wf"].reshape(1, A).astype(jnp.float32)          # (1, A)
    enc_f32 = encoder_out.astype(jnp.float32)

    ctx_out, attn_out = pl.pallas_call(
        bahdanau_kernel,
        out_shape=(
            jax.ShapeDtypeStruct((B_pad, E), jnp.float32),
            jax.ShapeDtypeStruct((B_pad, L), jnp.float32),
        ),
        grid_spec=pltpu.PrefetchScalarGridSpec(
            num_scalar_prefetch=0,
            grid=(n_blocks,),
            in_specs=[
                pl.BlockSpec((TB, L, E), lambda b: (b, 0, 0)),   # encoder_out
                pl.BlockSpec((TB, A), lambda b: (b, 0)),         # dec_comb
                pl.BlockSpec((E, A), lambda b: (0, 0)),          # We^T
                pl.BlockSpec((1, A), lambda b: (0, 0)),          # Wf row
            ],
            out_specs=[
                pl.BlockSpec((TB, E), lambda b: (b, 0)),         # context
                pl.BlockSpec((TB, L), lambda b: (b, 0)),         # attention
            ],
        ),
        compiler_params=pltpu.CompilerParams(
            dimension_semantics=("parallel",)),
    )(enc_f32, dec_comb, we_t, wf_row)

    return ctx_out[:B], attn_out[:B]


def reference_jax(encoder_out, hidden_decoder, params):
    enc_proj = encoder_out @ params["We"].T + params["be"]
    dec_proj = hidden_decoder @ params["Wd"].T + params["bd"]
    energies = (jnp.tanh(enc_proj + dec_proj[:, None, :]) @ params["Wf"].T
                + params["bf"])[..., 0]
    attn = jax.nn.softmax(energies, axis=1)
    ctx = jnp.sum(encoder_out * attn[..., None], axis=1)
    return ctx, attn


if __name__ == "__main__":
    # small shapes consistent with the module
    B, L = 2, 8
    encoder_dim, decoder_dim, attention_dim = 32, 32, 32

    key = jax.random.PRNGKey(0)
    ks = jax.random.split(key, 8)

    params = {
        "We": jax.random.normal(ks[0], (attention_dim, encoder_dim), jnp.float32) * 0.1,
        "be": jax.random.normal(ks[1], (attention_dim,), jnp.float32) * 0.1,
        "Wd": jax.random.normal(ks[2], (attention_dim, decoder_dim), jnp.float32) * 0.1,
        "bd": jax.random.normal(ks[3], (attention_dim,), jnp.float32) * 0.1,
        "Wf": jax.random.normal(ks[4], (1, attention_dim), jnp.float32) * 0.1,
        "bf": jax.random.normal(ks[5], (1,), jnp.float32) * 0.1,
    }

    encoder_out = jax.random.normal(ks[6], (B, L, encoder_dim), jnp.float32)
    hidden_decoder = jax.random.normal(ks[7], (B, decoder_dim), jnp.float32)

    ctx, attn = attention_bahdanau(encoder_out, hidden_decoder, params)
    jax.block_until_ready((ctx, attn))

    ctx_ref, attn_ref = reference_jax(encoder_out, hidden_decoder, params)
    assert ctx.shape == (B, encoder_dim) and attn.shape == (B, L)
    assert jnp.allclose(ctx, ctx_ref, atol=1e-5, rtol=1e-5), "context mismatch"
    assert jnp.allclose(attn, attn_ref, atol=1e-5, rtol=1e-5), "attention mismatch"

    print("KERNEL_OK")
</pallas_src>

<mosaic_0001>
module attributes {stable_mosaic.version = 11 : i64} {
  func.func @bahdanau_kernel(%arg0: i32, %arg1: memref<2x8x32xf32, #tpu.memory_space<vmem>>, %arg2: memref<2x32xf32, #tpu.memory_space<vmem>>, %arg3: memref<32x32xf32, #tpu.memory_space<vmem>>, %arg4: memref<1x32xf32, #tpu.memory_space<vmem>>, %arg5: memref<2x32xf32, #tpu.memory_space<vmem>>, %arg6: memref<2x8xf32, #tpu.memory_space<vmem>>) attributes {dimension_semantics = [#tpu.dimension_semantics<parallel>], iteration_bounds = array<i64: 1>, scalar_prefetch = 0 : i64, scratch_operands = 0 : i64, tpu.core_type = #tpu.core_type<tc>, window_params = [{transform_indices = @transform_0, window_bounds = array<i64: 2, 8, 32>}, {transform_indices = @transform_1, window_bounds = array<i64: 2, 32>}, {pipeline_mode = #tpu.pipeline_mode<synchronous>, transform_indices = @transform_2, window_bounds = array<i64: 32, 32>}, {pipeline_mode = #tpu.pipeline_mode<synchronous>, transform_indices = @transform_3, window_bounds = array<i64: 1, 32>}, {transform_indices = @transform_4, window_bounds = array<i64: 2, 32>}, {transform_indices = @transform_5, window_bounds = array<i64: 2, 8>}]} {
    %c0 = arith.constant 0 : index
    %c0_0 = arith.constant 0 : index
    %c0_1 = arith.constant 0 : index
    %0 = vector.load %arg1[%c0, %c0_0, %c0_1] : memref<2x8x32xf32, #tpu.memory_space<vmem>>, vector<2x8x32xf32>
    %1 = vector.shape_cast %0 : vector<2x8x32xf32> to vector<16x32xf32>
    %c0_2 = arith.constant 0 : index
    %c0_3 = arith.constant 0 : index
    %2 = vector.load %arg3[%c0_2, %c0_3] : memref<32x32xf32, #tpu.memory_space<vmem>>, vector<32x32xf32>
    %cst = arith.constant dense<0.000000e+00> : vector<16x32xf32>
    %3 = tpu.matmul %1, %2, %cst {dimension_numbers = #tpu.dot_dimension_numbers<[1], [0], [0], [1], [0, 0, 1, 1], [], []>} : vector<16x32xf32>, vector<32x32xf32>, vector<16x32xf32> -> vector<16x32xf32>
    %4 = vector.shape_cast %3 : vector<16x32xf32> to vector<2x8x32xf32>
    %c0_4 = arith.constant 0 : index
    %c0_5 = arith.constant 0 : index
    %5 = vector.load %arg2[%c0_4, %c0_5] : memref<2x32xf32, #tpu.memory_space<vmem>>, vector<2x32xf32>
    %6 = vector.shape_cast %5 : vector<2x32xf32> to vector<2x1x32xf32>
    %7 = vector.broadcast %6 : vector<2x1x32xf32> to vector<2x8x32xf32>
    %8 = arith.addf %4, %7 : vector<2x8x32xf32>
    %9 = math.tanh %8 : vector<2x8x32xf32>
    %c0_6 = arith.constant 0 : index
    %c0_7 = arith.constant 0 : index
    %10 = vector.load %arg4[%c0_6, %c0_7] : memref<1x32xf32, #tpu.memory_space<vmem>>, vector<1x32xf32>
    %11 = vector.shape_cast %10 : vector<1x32xf32> to vector<1x1x32xf32>
    %12 = vector.broadcast %11 : vector<1x1x32xf32> to vector<2x8x32xf32>
    %13 = arith.mulf %9, %12 : vector<2x8x32xf32>
    %cst_8 = arith.constant dense<0.000000e+00> : vector<2x8xf32>
    %14 = vector.multi_reduction <add>, %13, %cst_8 [2] : vector<2x8x32xf32> to vector<2x8xf32>
    %cst_9 = arith.constant dense<0xFF800000> : vector<2xf32>
    %15 = vector.multi_reduction <maximumf>, %14, %cst_9 [1] : vector<2x8xf32> to vector<2xf32>
    %16 = vector.shape_cast %15 : vector<2xf32> to vector<2x1xf32>
    %17 = vector.broadcast %16 : vector<2x1xf32> to vector<2x8xf32>
    %18 = arith.subf %14, %17 : vector<2x8xf32>
    %19 = math.exp %18 : vector<2x8xf32>
    %cst_10 = arith.constant dense<0.000000e+00> : vector<2xf32>
    %20 = vector.multi_reduction <add>, %19, %cst_10 [1] : vector<2x8xf32> to vector<2xf32>
    %21 = vector.shape_cast %20 : vector<2xf32> to vector<2x1xf32>
    %22 = tpu.reciprocal %21 : vector<2x1xf32> -> vector<2x1xf32>
    %23 = vector.broadcast %22 : vector<2x1xf32> to vector<2x8xf32>
    %24 = arith.mulf %19, %23 : vector<2x8xf32>
    %c0_11 = arith.constant 0 : index
    %c0_12 = arith.constant 0 : index
    %25 = vector.load %arg6[%c0_11, %c0_12] : memref<2x8xf32, #tpu.memory_space<vmem>>, vector<2x8xf32>
    tpu.vector_store %arg6[%c0_11, %c0_12], %24 {strides = array<i32>} : memref<2x8xf32, #tpu.memory_space<vmem>>, vector<2x8xf32>,
    %26 = vector.shape_cast %24 : vector<2x8xf32> to vector<2x1x8xf32>
    "tpu.trace_start"() <{level = 10 : i32, message = "bql,ble->bqe"}> : () -> ()
    %cst_13 = arith.constant dense<0.000000e+00> : vector<2x1x32xf32>
    %27 = tpu.matmul %26, %0, %cst_13 {dimension_numbers = #tpu.dot_dimension_numbers<[2], [1], [1], [2], [0, 0, 0, 1, 1, 2], [0], [0]>} : vector<2x1x8xf32>, vector<2x8x32xf32>, vector<2x1x32xf32> -> vector<2x1x32xf32>
    "tpu.trace_stop"() : () -> ()
    %28 = vector.shape_cast %27 : vector<2x1x32xf32> to vector<2x32xf32>
    %c0_14 = arith.constant 0 : index
    %c0_15 = arith.constant 0 : index
    %29 = vector.load %arg5[%c0_14, %c0_15] : memref<2x32xf32, #tpu.memory_space<vmem>>, vector<2x32xf32>
    tpu.vector_store %arg5[%c0_14, %c0_15], %28 {strides = array<i32>} : memref<2x32xf32, #tpu.memory_space<vmem>>, vector<2x32xf32>,
    return
  }
  func.func @transform_0(%arg0: i32) -> (i32, i32, i32) {
    %c0_i32 = arith.constant 0 : i32
    %c0_i32_0 = arith.constant 0 : i32
    %c0_i32_1 = arith.constant 0 : i32
    return %arg0, %c0_i32, %c0_i32_0 : i32, i32, i32
  }
  func.func @transform_1(%arg0: i32) -> (i32, i32) {
    %c0_i32 = arith.constant 0 : i32
    %c0_i32_0 = arith.constant 0 : i32
    return %arg0, %c0_i32 : i32, i32
  }
  func.func @transform_2(%arg0: i32) -> (i32, i32) {
    %c0_i32 = arith.constant 0 : i32
    %c0_i32_0 = arith.constant 0 : i32
    %c0_i32_1 = arith.constant 0 : i32
    return %c0_i32, %c0_i32_0 : i32, i32
  }
  func.func @transform_3(%arg0: i32) -> (i32, i32) {
    %c0_i32 = arith.constant 0 : i32
    %c0_i32_0 = arith.constant 0 : i32
    %c0_i32_1 = arith.constant 0 : i32
    return %c0_i32, %c0_i32_0 : i32, i32
  }
  func.func @transform_4(%arg0: i32) -> (i32, i32) {
    %c0_i32 = arith.constant 0 : i32
    %c0_i32_0 = arith.constant 0 : i32
    return %arg0, %c0_i32 : i32, i32
  }
  func.func @transform_5(%arg0: i32) -> (i32, i32) {
    %c0_i32 = arith.constant 0 : i32
    %c0_i32_0 = arith.constant 0 : i32
    return %arg0, %c0_i32 : i32, i32
  }
}

</mosaic_0001>

<bundles_post_ra>
// kernel: tpu_custom_call.1
= control target key start
LH: loop header
LB: loop body
LE: loop exit
PB: predicated region body
PF: predicated region fallthrough
CT: control target
= control target key end

     0   :  { %11 = vsyncpa [#allocation3], 0  ;;  %s750_s0 = inlined_call_operand.hbm [shape: f32[2,8,32], index: 0, kind: input, shape index: {}]   ;;  %s751_s1 = inlined_call_operand.vmem [shape: f32[2,32], index: 1, kind: input, shape index: {}]   ;;  %s752_s2 = inlined_call_operand.hbm [shape: f32[32,32], index: 2, kind: input, shape index: {}]   ;;  %s753_s3 = inlined_call_operand.vmem [shape: f32[1,32], index: 3, kind: input, shape index: {}]   ;;  %s754_s4 = inlined_call_operand.hbm [shape: f32[2,32], index: 4, kind: output, shape index: {0}]   ;;  %s755_s5 = inlined_call_operand.hbm [shape: f32[2,8], index: 5, kind: output, shape index: {1}]  }
   0x1   :  { %12 = vsyncpa [#allocation6], 0 }
   0x2   :  { %13 = vsyncpa [#allocation4], 0 }
   0x3   :  { %14 = vsyncpa [#allocation9], 0  ;;  %s625_s18 = smov [#allocation2]   ;;  %s529_s22 = scalar_lea.hbm %s750_s0, 256 }
   0x4   :  { %s20_s19 = sshll.u32 %s625_s18, 4  ;;  %p530_p0 = scmp.ne.s32.totalorder %s750_s0, %s529_s22  ;;  %s21_s19 = int_to_ptr.vmem [resolvable:$true] %s20_s19 }
   0x5   :  { %p533_p1 = scmp.lt.u32.totalorder %s529_s22, %s750_s0 }
   0x7   :  { %p535_p2 = pnand %p533_p1, %p530_p0 }
   0x9   :  { %538 = shalt.err (!%p535_p2)
}
   0xa   :  { %s539_s27 = scalar_lea.vmem %s21_s19, 256  ;;  %p544_p4 = scmp.lt.s32.totalorder %s21_s19, %s21_s19 }
   0xb   :  { %p540_p3 = scmp.ne.s32.totalorder %s21_s19, %s539_s27  ;;  %p545_p5 = scmp.lt.s32.totalorder %s539_s27, %s539_s27 }
   0xd   :  { %p546_p6 = por %p545_p5, %p544_p4 }
   0xf   :  { %p547_p7 = pnand %p546_p6, %p540_p3 }
  0x11   :  { %550 = shalt.err (!%p547_p7)
}
  0x12   :  { %s626_s28 = smov 128   ;;  %s627_s29 = smov 8  }
  0x13   :  { %26 = dma.hbm_to_vmem [thread:$0]  %s750_s0, 256, %s21_s19, [#allocation3], %s626_s28, %s626_s28, %s627_s29  }
  0x14   :  { %s628_s7 = smov [#allocation5]   ;;  %s551_s11 = scalar_lea.hbm %s752_s2, 512 }
  0x15   :  { %s34_s8 = sshll.u32 %s628_s7, 4  ;;  %p552_p8 = scmp.ne.s32.totalorder %s752_s2, %s551_s11  ;;  %s35_s8 = int_to_ptr.vmem [resolvable:$true] %s34_s8 }
  0x16   :  { %p555_p9 = scmp.lt.u32.totalorder %s551_s11, %s752_s2 }
  0x18   :  { %p557_p10 = pnand %p555_p9, %p552_p8 }
  0x1a   :  { %560 = shalt.err (!%p557_p10)
}
  0x1b   :  { %s561_s16 = scalar_lea.vmem %s35_s8, 512  ;;  %p566_p12 = scmp.lt.s32.totalorder %s35_s8, %s35_s8 }
  0x1c   :  { %p562_p11 = scmp.ne.s32.totalorder %s35_s8, %s561_s16  ;;  %p567_p13 = scmp.lt.s32.totalorder %s561_s16, %s561_s16 }
  0x1e   :  { %p568_p0 = por %p567_p13, %p566_p12 }
  0x20   :  { %p569_p1 = pnand %p568_p0, %p562_p11 }
  0x22   :  { %572 = shalt.err (!%p569_p1)
}
  0x23   :  { %40 = dma.hbm_to_vmem [thread:$0]  %s752_s2, 512, %s35_s8, [#allocation6], %s626_s28, %s626_s28, %s627_s29  }
  0x24   :  { %617 = dma.done.wait [#allocation3], 256  }
  0x25   :  { %618 = vsyncadd [#allocation3], 4294967040 }
  0x26   :  { %619 = dma.done.wait [#allocation6], 512  }
  0x27   :  { %620 = vsyncadd [#allocation6], 4294966784  ;;  %vm55_vm0 = vcmask 261120   ;;  %v51_v0 = vld [vmem:[#allocation5] sm:$0xff]  ;;  %v52_v1 = vld [vmem:[#allocation5 + $0x8] sm:$0xff]  ;;  %v150_v10 = vlaneseq  ;;  %vm202_vm1 = vcmask 1041409  }
  0x28   :  { %v53_v2 = vld [vmem:[#allocation5 + $0x10] sm:$0xff]  ;;  %v499_v3 = vpack.c.bf16 %v52_v1, %v51_v0  ;;  %v54_v4 = vld [vmem:[#allocation5 + $0x18] sm:$0xff]  ;;  %v629_v8 = vmov 1966171168   ;;  %vm205_vm2 = vcmask 58368   ;;  %v630_v40 = vmov 0  }
  0x29   :  { %v689_v5 = vld [vmem:[#allocation2] sm:$0xff]  ;;  %v503_v6 = vpack.c.bf16 %v54_v4, %v53_v2  ;;  %v693_v7 = vld [vmem:[#allocation2 + $0x8] sm:$0xff]  ;;  %v148_v9 = vunpack.c.l.s4 %v629_v8  ;;  %v697_v12 = vshrl.u32 %v150_v10, 7  ;;  %v193_v32 = vand.u32 127, %v150_v10  ;;  %518 = vset.pattern.permute.xlu0 %v630_v40  ;;  %517 = vset.pattern.permute.xlu1 %v630_v40 }
  0x2a   :  { %486 = vmatprep.mubr.msk.f32.mxu0 %vm55_vm0, %v689_v5  ;;  %500 = vmatprep.subr.bf16.mxu0 %v499_v3  ;;  %v464_v13 = vld.sshfl [vmem:[%s751_s1] sm:$0x11 pattern:$0x75316420]  ;;  %v631_v57 = vmov 0.0   ;;  %vm632_vm3 = vmmov 0  }
  0x2b   :  { %502 = vmatpush3.bf16.msra.mxu0 %v499_v3  ;;  %v149_v11 = vunpack.c.0.s8 %v148_v9  ;;  %v146_v14 = vcombine.high %v464_v13, %v464_v13  ;;  %v704_v17 = vsub.s32 0, %v697_v12  ;;  %v465_v25 = vld [vmem:[%s753_s3] ss:$0 sm:$0xff]  ;;  %v196_v34 = vsub.s32 %v193_v32, %v697_v12  ;;  %489 = vmatprep.subr.mxu1 %v631_v57  ;;  %s633_s3 = smov [#allocation8]  }
  0x2c   :  { %504 = vmatprep.subr.bf16.mxu0 %v503_v6  ;;  %v216_v41 = vsub.s32 1, %v697_v12  ;;  %490 = vmatpush3.msra.mxu1 %v689_v5  ;;  %vm280_vm4 = vcmask 64512   ;;  %s448_s20 = sshll.u32 %s633_s3, 4  ;;  %s449_s20 = int_to_ptr.vmem [resolvable:$true] %s448_s20 }
  0x2d   :  { %v152_v15 = vsub.s32 %v149_v11, %v697_v12  ;;  %494 = vmatprep.subr.mxu1 %v631_v57  ;;  %491 = vmatprep.mubr.msk.f32.mxu1 %vm632_vm3, %v631_v57  ;;  %s573_s21 = scalar_lea.vmem %s449_s20, 32  ;;  %p578_p3 = scmp.lt.s32.totalorder %s449_s20, %s449_s20 }
  0x2e   :  { %p574_p2 = scmp.ne.s32.totalorder %s449_s20, %s573_s21  ;;  %p579_p4 = scmp.lt.s32.totalorder %s573_s21, %s573_s21 }
  0x2f   :  { %506 = vmatpush3.bf16.msra.mxu0 %v503_v6  ;;  %v160_v16 = vrot.slane %v146_v14, %v152_v15  ;;  %v153_v18 = vrot.slane %v464_v13, %v152_v15 }
  0x30   :  { %p580_p5 = por %p579_p4, %p578_p3 }
  0x31   :  { %v168_v19 = vrot.slane %v160_v16, %v704_v17  ;;  %v164_v20 = vrot.slane %v153_v18, %v704_v17 }
  0x32   :  { %487 = vmatmul.mubr.msk.f32.vlgmr.msra.gmra.mrb[0].mxu0 %vm55_vm0, %v693_v7  ;;  %p581_p6 = pnand %p580_p5, %p574_p2 }
 0x105   :  { %v488_v21 = vpop.f32.mrb[0].mxu0 }
 0x106   :  { %v172_v22 = vadd.f32 %v488_v21, %v168_v19  ;;  %v128_v23 = vpop.f32.mrb[1].mxu0 }
 0x107   :  { %v171_v24 = vadd.f32 %v164_v20, %v128_v23 }
 0x108   :  { %519 = vtanh.f32 %v172_v22 }
 0x109   :  { %521 = vtanh.f32 %v171_v24 }
 0x112   :  { %v520_v26 = vpop.eup %519 }
 0x113   :  { %v522_v27 = vpop.eup %521  ;;  %v183_v30 = vmul.f32 %v520_v26, %v465_v25 }
 0x114   :  { %v182_v28 = vmul.f32 %v522_v27, %v465_v25 }
 0x115   :  { %v187_v31 = vsel %vm55_vm0, %v183_v30, 0.0 }
 0x116   :  { %v184_v29 = vsel %vm55_vm0, %v182_v28, 0.0 }
 0x117   :  { %185 = vadd.xlane.f32.xlu0 %v184_v29 }
 0x11b   :  { %188 = vadd.xlane.f32.xlu0 %v187_v31 }
 0x1a4   :  { %v186_v33 = vpop.xlane.xlu0 %185 }
 0x1a5   :  { %v197_v36 = vrot.slane %v186_v33, %v196_v34 }
 0x1a8   :  { %v189_v35 = vpop.xlane.xlu0 %188 }
 0x1a9   :  { %v201_v37 = vrot.slane %v189_v35, %v196_v34 }
 0x1ab   :  { %v203_v38 = vsel %vm202_vm1, %v201_v37, %v197_v36 }
 0x1ac   :  { %v206_v39 = vsel %vm205_vm2, %v203_v38, -inf }
 0x1ad   :  { %207 = vmax.xlane.f32.xlu1 %v206_v39 }
 0x23a   :  { %v208_v42 = vpop.xlane.xlu1 %207 }
 0x23b   :  { %v213_v43 = vrot.slane %v208_v42, %v704_v17  ;;  %v217_v44 = vrot.slane %v208_v42, %v216_v41 }
 0x23d   :  { %v220_v45 = vsub.f32 %v186_v33, %v213_v43  ;;  %v221_v46 = vsub.f32 %v189_v35, %v217_v44 }
 0x23f   :  { %v222_v47 = vmul.f32 1.442695, %v220_v45  ;;  %v224_v48 = vmul.f32 1.442695, %v221_v46 }
 0x241   :  { %523 = vpow2.f32 %v222_v47 }
 0x242   :  { %525 = vpow2.f32 %v224_v48 }
 0x24b   :  { %v524_v49 = vpop.eup %523 }
 0x24c   :  { %v526_v50 = vpop.eup %525  ;;  %229 = vperm.xlu1 %517, %v524_v49  }
 0x24d   :  { %232 = vperm.xlu0 %518, %v526_v50  }
 0x2cb   :  { %v230_v51 = vpop.permute.xlu1 %229 }
 0x2cc   :  { %v233_v52 = vpop.permute.xlu0 %232  ;;  %v237_v53 = vrot.slane %v230_v51, %v196_v34 }
 0x2cd   :  { %v241_v54 = vrot.slane %v233_v52, %v196_v34 }
 0x2cf   :  { %v242_v55 = vsel %vm202_vm1, %v241_v54, %v237_v53 }
 0x2d0   :  { %v244_v56 = vsel %vm205_vm2, %v242_v55, 0.0 }
 0x2d1   :  { %245 = vadd.xlane.f32.xlu1 %v244_v56 }
 0x35e   :  { %v246_v58 = vpop.xlane.xlu1 %245 }
 0x35f   :  { %527 = vrcp.f32 %v246_v58 }
 0x369   :  { %v528_v59 = vpop.eup %527 }
 0x36a   :  { %v252_v60 = vrot.slane %v528_v59, %v704_v17  ;;  %v256_v62 = vrot.slane %v528_v59, %v216_v41 }
 0x36c   :  { %v259_v61 = vmul.f32 %v524_v49, %v252_v60  ;;  %v260_v63 = vmul.f32 %v526_v50, %v256_v62 }
 0x36e   :  { %264 = vperm.xlu0 %518, %v259_v61  }
 0x372   :  { %267 = vperm.xlu0 %518, %v260_v63  }
 0x3ed   :  { %v265_v0 = vpop.permute.xlu0 %264 }
 0x3ee   :  { %v272_v1 = vrot.slane %v265_v0, %v196_v34 }
 0x3f0   :  { %492 = vmatmul.mubr.msk.f32.vlgmr.msra.gmra.mrb[0].mxu1 %vm280_vm4, %v272_v1 }
 0x3f1   :  { %495 = vmatpush3.msra.mxu1 %v693_v7  ;;  %v268_v2 = vpop.permute.xlu0 %267  ;;  %496 = vmatprep.mubr.msk.f32.mxu1 %vm632_vm3, %v631_v57 }
 0x3f2   :  { %v276_v3 = vrot.slane %v268_v2, %v196_v34 }
 0x3f4   :  { %497 = vmatmul.mubr.msk.f32.vlgmr.msra.gmra.mrb[2].mxu1 %vm280_vm4, %v276_v3  ;;  %v277_v4 = vsel %vm202_vm1, %v276_v3, %v272_v1 }
 0x3f5   :  { %279 = vst.msk [vmem:[#allocation8] sm:$0x3] %vm205_vm2, %v277_v4 }
 0x3f6   :  { %584 = shalt.err (!%p581_p6)
}
 0x3f7   :  { %s585_s24 = scalar_lea.hbm %s755_s5, 32 }
 0x3f8   :  { %p586_p7 = scmp.ne.s32.totalorder %s755_s5, %s585_s24  ;;  %p589_p8 = scmp.lt.u32.totalorder %s585_s24, %s755_s5 }
 0x3fa   :  { %p591_p9 = pnand %p589_p8, %p586_p7 }
 0x3fc   :  { %594 = shalt.err (!%p591_p9)
}
 0x3fd   :  { %451 = dma.vmem_to_hbm [thread:$0]  %s449_s20, 32, %s755_s5, [#allocation9]   ;;  %vm430_vm5 = vcmask 254976  }
 0x3fe   :  { %s634_s6 = smov [#allocation7]  }
 0x3ff   :  { %s438_s7 = sshll.u32 %s634_s6, 4  ;;  %s439_s7 = int_to_ptr.vmem [resolvable:$true] %s438_s7 }
 0x400   :  { %s595_s8 = scalar_lea.vmem %s439_s7, 32  ;;  %p600_p11 = scmp.lt.s32.totalorder %s439_s7, %s439_s7 }
 0x401   :  { %p596_p10 = scmp.ne.s32.totalorder %s439_s7, %s595_s8  ;;  %p601_p12 = scmp.lt.s32.totalorder %s595_s8, %s595_s8 }
 0x403   :  { %p602_p13 = por %p601_p12, %p600_p11 }
 0x405   :  { %p603_p0 = pnand %p602_p13, %p596_p10 }
 0x4c3   :  { %v349_v5 = vpop.f32.mrb[0].mxu1 }
 0x4c4   :  { %v493_v6 = vpop.f32.mrb[1].mxu1 }
 0x4c7   :  { %v421_v7 = vpop.f32.mrb[2].mxu1 }
 0x4c8   :  { %v427_v8 = vrot.slane %v421_v7, 7  ;;  %v498_v9 = vpop.f32.mrb[3].mxu1 }
 0x4ca   :  { %v428_v10 = vsel %vm202_vm1, %v427_v8, %v349_v5 }
 0x4cb   :  { %431 = vst.msk [vmem:[#allocation7] sm:$0x3] %vm430_vm5, %v428_v10 }
 0x4cc   :  { %606 = shalt.err (!%p603_p0)
}
 0x4cd   :  { %s607_s10 = scalar_lea.hbm %s754_s4, 32 }
 0x4ce   :  { %p608_p1 = scmp.ne.s32.totalorder %s754_s4, %s607_s10  ;;  %p611_p2 = scmp.lt.u32.totalorder %s607_s10, %s754_s4 }
 0x4d0   :  { %p613_p3 = pnand %p611_p2, %p608_p1 }
 0x4d2   :  { %616 = shalt.err (!%p613_p3)
}
 0x4d3   :  { %441 = dma.vmem_to_hbm [thread:$0]  %s439_s7, 32, %s754_s4, [#allocation4]  }
 0x4d4   :  { %621 = dma.done.wait [#allocation4], 32  }
 0x4d5   :  { %622 = vsyncadd [#allocation4], 4294967264 }
 0x4d6   :  { %623 = dma.done.wait [#allocation9], 32  }
 0x4d7   :  { %624 = vsyncadd [#allocation9], 4294967264 }
 0x4d8   :  { %458 = vsyncpa [#allocation3], 1 }
 0x4d9   :  { %459 = vsyncpa [#allocation6], 1 }
 0x4da   :  { %460 = vsyncpa [#allocation4], 1 }
 0x4db   :  { %461 = vsyncpa [#allocation9], 1 }

</bundles_post_ra>
